<compile_context>
chip_gen: v7x
topology: tpu7x:2x2x1
jax: 0.10.0
libtpu: 0.0.40
codegen_flags: <defaults>
</compile_context>

<pallas_src>
import functools

import jax
import jax.numpy as jnp
from jax.experimental import pallas as pl
from jax.experimental.pallas import tpu as pltpu


def _round_up(x, m):
    return ((x + m - 1) // m) * m


def _inverse_feature_projection_kernel(x_ref, w_ref, b_ref, o_ref, *, compute_dtype):
    # x_ref : (tm, D)     f32 tile of flattened (B*T, D) input (cast in-kernel)
    # w_ref : (D, E_pad)  bf16 projection weight, transposed to (in, out), resident
    # b_ref : (1, E_pad)  f32 projection bias, resident
    # o_ref : (tm, E_pad) f32 output tile (lane-dense: E_pad % 128 == 0)
    x = x_ref[...].astype(compute_dtype)          # VPU cast, hidden under DMA
    acc = jnp.dot(x, w_ref[...], preferred_element_type=jnp.float32)
    o_ref[...] = (acc + b_ref[...]).astype(o_ref.dtype)


def inverse_feature_projection(x, w, b, *, tm=512, compute_dtype=jnp.bfloat16):
    """x: (B, T, embed_dim); w: (last_conv_dim, embed_dim) PyTorch Linear weight; b: (last_conv_dim,)."""
    B, T, D = x.shape
    E = w.shape[0]
    assert w.shape == (E, D)
    M = B * T

    # Row tile: multiple of 8 sublanes; clamp so tiny inputs don't pad to 512.
    tm = max(8, min(_round_up(tm, 8), _round_up(M, 8)))
    M_pad = _round_up(M, tm)          # pad rows only when tm does not divide M
    E_pad = _round_up(E, 128)         # lane-dense output (unmasked stores)

    # Input: reshape is free for contiguous arrays; pad only if required.
    x2 = x.reshape(M, D)
    if M_pad != M:
        x2 = jnp.pad(x2, ((0, M_pad - M), (0, 0)))

    # Weight / bias are tiny: prepare once, keep resident in VMEM.
    w_t = jnp.transpose(w)            # (D, E)
    if E_pad != E:
        w_t = jnp.pad(w_t, ((0, 0), (0, E_pad - E)))
    w_t = w_t.astype(compute_dtype)

    b2 = b.astype(jnp.float32)
    if E_pad != E:
        b2 = jnp.pad(b2, (0, E_pad - E))
    b2 = b2.reshape(1, E_pad)

    kernel = functools.partial(
        _inverse_feature_projection_kernel, compute_dtype=compute_dtype)

    out = pl.pallas_call(
        kernel,
        out_shape=jax.ShapeDtypeStruct((M_pad, E_pad), x.dtype),
        grid_spec=pltpu.PrefetchScalarGridSpec(
            num_scalar_prefetch=0,
            grid=(M_pad // tm,),
            in_specs=[
                pl.BlockSpec((tm, D), lambda i: (i, 0)),
                # Constant index_map -> weight/bias stay resident in VMEM.
                pl.BlockSpec((D, E_pad), lambda i: (0, 0)),
                pl.BlockSpec((1, E_pad), lambda i: (0, 0)),
            ],
            out_specs=pl.BlockSpec((tm, E_pad), lambda i: (i, 0)),
        ),
        compiler_params=pltpu.CompilerParams(
            dimension_semantics=("parallel",)),
    )(x2, w_t, b2)

    return out[:M, :E].reshape(B, T, E)


def inverse_feature_projection_ref(x, w, b, eps=1e-5):
    # Pure-JAX reference mirroring the PyTorch forward (eval mode).
    # LayerNorm output is computed then discarded, exactly like the module.
    mean = jnp.mean(x, axis=-1, keepdims=True)
    var = jnp.mean((x - mean) ** 2, axis=-1, keepdims=True)
    _norm = (x - mean) * jax.lax.rsqrt(var + eps)   # discarded by the module
    return x @ w.T + b


if __name__ == "__main__":
    B, T = 2, 8
    embed_dim = 48        # D (input features of the projection)
    last_conv_dim = 32    # E (output features of the projection)

    key = jax.random.PRNGKey(0)
    kx, kw, kb = jax.random.split(key, 3)

    x = jax.random.normal(kx, (B, T, embed_dim), dtype=jnp.float32)
    # Deterministic synthetic parameters (no checkpoint).
    w = jax.random.normal(kw, (last_conv_dim, embed_dim), dtype=jnp.float32) * 0.02
    b = jax.random.normal(kb, (last_conv_dim,), dtype=jnp.float32) * 0.01

    out = inverse_feature_projection(x, w, b)
    out = jax.block_until_ready(out)

    ref = inverse_feature_projection_ref(x, w, b)
    assert out.shape == (B, T, last_conv_dim)
    # bf16 operands with f32 accumulation -> loosened tolerance vs f32 reference.
    assert jnp.allclose(out, ref, atol=1e-2, rtol=1e-2), float(
        jnp.max(jnp.abs(out - ref)))

    print("KERNEL_OK")
</pallas_src>

<mosaic_0001>
module attributes {stable_mosaic.version = 11 : i64} {
  func.func @_inverse_feature_projection_kernel(%arg0: i32, %arg1: memref<16x48xf32, #tpu.memory_space<vmem>>, %arg2: memref<48x128xbf16, #tpu.memory_space<vmem>>, %arg3: memref<1x128xf32, #tpu.memory_space<vmem>>, %arg4: memref<16x128xf32, #tpu.memory_space<vmem>>) attributes {dimension_semantics = [#tpu.dimension_semantics<parallel>], iteration_bounds = array<i64: 1>, scalar_prefetch = 0 : i64, scratch_operands = 0 : i64, tpu.core_type = #tpu.core_type<tc>, window_params = [{transform_indices = @transform_0, window_bounds = array<i64: 16, 48>}, {pipeline_mode = #tpu.pipeline_mode<synchronous>, transform_indices = @transform_1, window_bounds = array<i64: 48, 128>}, {pipeline_mode = #tpu.pipeline_mode<synchronous>, transform_indices = @transform_2, window_bounds = array<i64: 1, 128>}, {transform_indices = @transform_3, window_bounds = array<i64: 16, 128>}]} {
    %c0 = arith.constant 0 : index
    %c0_0 = arith.constant 0 : index
    %0 = vector.load %arg1[%c0, %c0_0] : memref<16x48xf32, #tpu.memory_space<vmem>>, vector<16x48xf32>
    %1 = arith.truncf %0 : vector<16x48xf32> to vector<16x48xbf16>
    %c0_1 = arith.constant 0 : index
    %c0_2 = arith.constant 0 : index
    %2 = vector.load %arg2[%c0_1, %c0_2] : memref<48x128xbf16, #tpu.memory_space<vmem>>, vector<48x128xbf16>
    %cst = arith.constant dense<0.000000e+00> : vector<16x128xf32>
    %3 = tpu.matmul %1, %2, %cst {dimension_numbers = #tpu.dot_dimension_numbers<[1], [0], [0], [1], [0, 0, 1, 1], [], []>} : vector<16x48xbf16>, vector<48x128xbf16>, vector<16x128xf32> -> vector<16x128xf32>
    %c0_3 = arith.constant 0 : index
    %c0_4 = arith.constant 0 : index
    %4 = vector.load %arg3[%c0_3, %c0_4] : memref<1x128xf32, #tpu.memory_space<vmem>>, vector<1x128xf32>
    %5 = vector.broadcast %4 : vector<1x128xf32> to vector<16x128xf32>
    %6 = arith.addf %3, %5 : vector<16x128xf32>
    %c0_5 = arith.constant 0 : index
    %c0_6 = arith.constant 0 : index
    %7 = vector.load %arg4[%c0_5, %c0_6] : memref<16x128xf32, #tpu.memory_space<vmem>>, vector<16x128xf32>
    tpu.vector_store %arg4[%c0_5, %c0_6], %6 {strides = array<i32>} : memref<16x128xf32, #tpu.memory_space<vmem>>, vector<16x128xf32>,
    return
  }
  func.func @transform_0(%arg0: i32) -> (i32, i32) {
    %c0_i32 = arith.constant 0 : i32
    %c0_i32_0 = arith.constant 0 : i32
    return %arg0, %c0_i32 : i32, i32
  }
  func.func @transform_1(%arg0: i32) -> (i32, i32) {
    %c0_i32 = arith.constant 0 : i32
    %c0_i32_0 = arith.constant 0 : i32
    %c0_i32_1 = arith.constant 0 : i32
    return %c0_i32, %c0_i32_0 : i32, i32
  }
  func.func @transform_2(%arg0: i32) -> (i32, i32) {
    %c0_i32 = arith.constant 0 : i32
    %c0_i32_0 = arith.constant 0 : i32
    %c0_i32_1 = arith.constant 0 : i32
    return %c0_i32, %c0_i32_0 : i32, i32
  }
  func.func @transform_3(%arg0: i32) -> (i32, i32) {
    %c0_i32 = arith.constant 0 : i32
    %c0_i32_0 = arith.constant 0 : i32
    return %arg0, %c0_i32 : i32, i32
  }
}

</mosaic_0001>

<bundles_post_ra>
// kernel: tpu_custom_call.1
= control target key start
LH: loop header
LB: loop body
LE: loop exit
PB: predicated region body
PF: predicated region fallthrough
CT: control target
= control target key end

     0   :  { %8 = vsyncpa [#allocation3], 0  ;;  %s320_s0 = inlined_call_operand.hbm [shape: f32[16,48], index: 0, kind: input, shape index: {}]   ;;  %s321_s1 = inlined_call_operand.hbm [shape: bf16[48,128], index: 1, kind: input, shape index: {}]   ;;  %s322_s2 = inlined_call_operand.vmem [shape: f32[1,128], index: 2, kind: input, shape index: {}]   ;;  %s323_s3 = inlined_call_operand.hbm [shape: f32[16,128], index: 3, kind: output, shape index: {}]  }
   0x1   :  { %9 = vsyncpa [#allocation6], 0 }
   0x2   :  { %10 = vsyncpa [#allocation4], 0  ;;  %s246_s12 = smov [#allocation2]   ;;  %s174_s16 = scalar_lea.hbm %s320_s0, 256 }
   0x3   :  { %s16_s13 = sshll.u32 %s246_s12, 4  ;;  %p175_p0 = scmp.ne.s32.totalorder %s320_s0, %s174_s16  ;;  %s17_s13 = int_to_ptr.vmem [resolvable:$true] %s16_s13 }
   0x4   :  { %p178_p1 = scmp.lt.u32.totalorder %s174_s16, %s320_s0 }
   0x6   :  { %p180_p2 = pnand %p178_p1, %p175_p0 }
   0x8   :  { %183 = shalt.err (!%p180_p2)
}
   0x9   :  { %s184_s21 = scalar_lea.vmem %s17_s13, 256  ;;  %p189_p4 = scmp.lt.s32.totalorder %s17_s13, %s17_s13 }
   0xa   :  { %p185_p3 = scmp.ne.s32.totalorder %s17_s13, %s184_s21  ;;  %p190_p5 = scmp.lt.s32.totalorder %s184_s21, %s184_s21 }
   0xc   :  { %p191_p6 = por %p190_p5, %p189_p4 }
   0xe   :  { %p192_p7 = pnand %p191_p6, %p185_p3 }
  0x10   :  { %195 = shalt.err (!%p192_p7)
}
  0x11   :  { %s247_s22 = smov 128   ;;  %s248_s23 = smov 8  }
  0x12   :  { %22 = dma.hbm_to_vmem [thread:$0]  %s320_s0, 256, %s17_s13, [#allocation3], %s247_s22, %s247_s22, %s248_s23  }
  0x13   :  { %s249_s26 = smov [#allocation5]   ;;  %s196_s30 = scalar_lea.hbm %s321_s1, 384 }
  0x14   :  { %s28_s27 = sshll.u32 %s249_s26, 4  ;;  %p197_p8 = scmp.ne.s32.totalorder %s321_s1, %s196_s30  ;;  %s29_s27 = int_to_ptr.vmem [resolvable:$true] %s28_s27 }
  0x15   :  { %p200_p9 = scmp.lt.u32.totalorder %s196_s30, %s321_s1 }
  0x17   :  { %p202_p10 = pnand %p200_p9, %p197_p8 }
  0x19   :  { %205 = shalt.err (!%p202_p10)
}
  0x1a   :  { %s206_s8 = scalar_lea.vmem %s29_s27, 384  ;;  %p211_p12 = scmp.lt.s32.totalorder %s29_s27, %s29_s27 }
  0x1b   :  { %p207_p11 = scmp.ne.s32.totalorder %s29_s27, %s206_s8  ;;  %p212_p13 = scmp.lt.s32.totalorder %s206_s8, %s206_s8 }
  0x1d   :  { %p213_p0 = por %p212_p13, %p211_p12 }
  0x1f   :  { %p214_p1 = pnand %p213_p0, %p207_p11 }
  0x21   :  { %217 = shalt.err (!%p214_p1)
}
  0x22   :  { %s250_s0 = smov 64   ;;  %s251_s9 = smov 4  }
  0x23   :  { %34 = dma.hbm_to_vmem [thread:$0]  %s321_s1, 384, %s29_s27, [#allocation6], %s250_s0, %s250_s0, %s251_s9  }
  0x24   :  { %240 = dma.done.wait [#allocation3], 256  }
  0x25   :  { %241 = vsyncadd [#allocation3], 4294967040 }
  0x26   :  { %242 = dma.done.wait [#allocation6], 384  }
  0x27   :  { %243 = vsyncadd [#allocation6], 4294966912  ;;  %v252_v0 = vmov 0.0   ;;  %vm253_vm0 = vmmov 0   ;;  %v171_v1 = vld [vmem:[#allocation5] sm:$0xff]   ;;  %v172_v2 = vld [vmem:[#allocation5 + $0x8] sm:$0xff]  }
  0x28   :  { %152 = vmatprep.subr.bf16.mxu0 %v252_v0  ;;  %158 = vmatprep.mubr.msk.bf16.mxu0 %vm253_vm0, %v252_v0  ;;  %v173_v3 = vld [vmem:[#allocation5 + $0x10] sm:$0xff]   ;;  %v45_v5 = vld [vmem:[#allocation2 + $0x8] sm:$0xff]  ;;  %vm78_vm1 = vcmask 392192   ;;  %s254_s13 = smov [#allocation7]  }
  0x29   :  { %153 = vmatpush3.bf16.msra.mxu0 %v171_v1  ;;  %v44_v4 = vld [vmem:[#allocation2] sm:$0xff]  ;;  %s130_s14 = sshll.u32 %s254_s13, 4  ;;  %s131_s14 = int_to_ptr.vmem [resolvable:$true] %s130_s14 }
  0x2a   :  { %154 = vmatprep.subr.bf16.mxu0 %v252_v0  ;;  %v46_v6 = vpack.c.bf16 %v45_v5, %v44_v4  ;;  %v143_v7 = vld [vmem:[%s322_s2] ss:$0 sm:$0xff]  ;;  %s218_s15 = scalar_lea.vmem %s131_s14, 256  ;;  %p223_p3 = scmp.lt.s32.totalorder %s131_s14, %s131_s14 }
  0x2b   :  { %p219_p2 = scmp.ne.s32.totalorder %s131_s14, %s218_s15  ;;  %p224_p4 = scmp.lt.s32.totalorder %s218_s15, %s218_s15 }
  0x2d   :  { %155 = vmatpush3.bf16.msra.mxu0 %v172_v2  ;;  %p225_p5 = por %p224_p4, %p223_p3 }
  0x2e   :  { %156 = vmatprep.subr.bf16.mxu0 %v252_v0 }
  0x2f   :  { %p226_p6 = pnand %p225_p5, %p219_p2 }
  0x31   :  { %157 = vmatpush3.bf16.msra.mxu0 %v173_v3 }
  0x34   :  { %159 = vmatmul.mubr.msk.bf16.vlgmr.msra.gmra.mrb[0].mxu0 %vm78_vm1, %v46_v6 }
 0x107   :  { %v116_v8 = vpop.f32.mrb[0].mxu0 }
 0x108   :  { %v117_v9 = vadd.f32 %v143_v7, %v116_v8  ;;  %v160_v10 = vpop.f32.mrb[1].mxu0 }
 0x109   :  { %v119_v11 = vpop.f32.mrb[2].mxu0 }
 0x10a   :  { %123 = vst [vmem:[#allocation7] sm:$0xff] %v117_v9  ;;  %v120_v12 = vadd.f32 %v143_v7, %v119_v11  ;;  %v161_v13 = vpop.f32.mrb[3].mxu0 }
 0x10c   :  { %124 = vst [vmem:[#allocation7 + $0x8] sm:$0xff] %v120_v12 }
 0x10d   :  { %229 = shalt.err (!%p226_p6)
}
 0x10e   :  { %s230_s17 = scalar_lea.hbm %s323_s3, 256 }
 0x10f   :  { %p231_p7 = scmp.ne.s32.totalorder %s323_s3, %s230_s17  ;;  %p234_p8 = scmp.lt.u32.totalorder %s230_s17, %s323_s3 }
 0x111   :  { %p236_p9 = pnand %p234_p8, %p231_p7 }
 0x113   :  { %239 = shalt.err (!%p236_p9)
}
 0x114   :  { %136 = dma.vmem_to_hbm [thread:$0]  %s131_s14, 256, %s323_s3, [#allocation4], %s247_s22, %s247_s22, %s248_s23  }
 0x115   :  { %244 = dma.done.wait [#allocation4], 256  }
 0x116   :  { %245 = vsyncadd [#allocation4], 4294967040 }
 0x117   :  { %140 = vsyncpa [#allocation3], 1 }
 0x118   :  { %141 = vsyncpa [#allocation6], 1 }
 0x119   :  { %142 = vsyncpa [#allocation4], 1 }

</bundles_post_ra>
